<compile_context>
chip_gen: v7x
topology: tpu7x:2x2x1
jax: 0.10.0
libtpu: 0.0.40
codegen_flags: <defaults>
</compile_context>

<pallas_src>
import functools

import jax
import jax.numpy as jnp
from jax.experimental import pallas as pl
from jax.experimental.pallas import tpu as pltpu


_TARGET_BLOCK_BYTES = 2 * 1024 * 1024   # ~2 MiB input blocks: at the HBM-roofline knee
_FAST_PATH_BUDGET = 24 * 1024 * 1024    # max per-block working set for the one-pass path
_VMEM_CAP = 48 * 1024 * 1024            # safe on v7x (64 MiB per-TC) and v5e/v6e


def _align_up(n, m):
    return ((n + m - 1) // m) * m


def _sublane(dtype):
    # Native sublane packing: 8 rows for 4-byte, 16 for 2-byte, 32 for 1-byte dtypes.
    return max(8, 32 // jnp.dtype(dtype).itemsize)


def _vmem_limit(in_block_bytes):
    # A few x the largest block + headroom; never near physical VMEM.
    return int(min(_VMEM_CAP, max(32 * 1024 * 1024, 8 * in_block_bytes)))


# ---------------------------------------------------------------------------
# Kernels
# ---------------------------------------------------------------------------

def _softmax_rowblock_kernel(x_ref, o_ref):
    """Full H*W row resident in VMEM: numerically-stable softmax per row."""
    x = x_ref[...]
    m = jnp.max(x, axis=-1, keepdims=True)                 # exact in input dtype
    e = jnp.exp(x.astype(jnp.float32) - m.astype(jnp.float32))
    s = jnp.sum(e, axis=-1, keepdims=True)
    o_ref[...] = (e * pl.reciprocal(s, approx=False)).astype(o_ref.dtype)


def _softmax_stats_kernel(x_ref, lse_ref, m_sc, l_sc, *, hw, hw_tile, mask_cols):
    """Tiled path, pass 1: online (max, sum-exp) over H*W blocks -> per-row lse."""
    j = pl.program_id(1)

    @pl.when(j == 0)
    def _():
        m_sc[...] = jnp.full_like(m_sc, -jnp.inf)
        l_sc[...] = jnp.zeros_like(l_sc)

    x = x_ref[...].astype(jnp.float32)
    if mask_cols:
        # Last H*W block overhangs the array: mask invalid lanes with -inf
        # (exp -> 0, no contribution to max/sum).  No jnp.pad needed.
        col = jax.lax.broadcasted_iota(jnp.int32, x.shape, 1)
        x = jnp.where(col < hw - j * hw_tile, x, -jnp.inf)

    m_new = jnp.maximum(m_sc[...], jnp.max(x, axis=-1, keepdims=True))
    l_sc[...] = (l_sc[...] * jnp.exp(m_sc[...] - m_new)
                 + jnp.sum(jnp.exp(x - m_new), axis=-1, keepdims=True))
    m_sc[...] = m_new

    @pl.when(j == pl.num_programs(1) - 1)
    def _():
        lse_ref[...] = m_sc[...] + jnp.log(l_sc[...])


def _softmax_apply_kernel(x_ref, lse_ref, o_ref):
    """Tiled path, pass 2: exp(x - lse), pure streaming."""
    o_ref[...] = jnp.exp(x_ref[...].astype(jnp.float32) - lse_ref[...]).astype(o_ref.dtype)


# ---------------------------------------------------------------------------
# Tiling heuristics (all generation-agnostic but v7x-aware: >=2 row blocks)
# ---------------------------------------------------------------------------

def _fast_path_ok(hw, itemsize, sub):
    hw_pad = _align_up(hw, 128)
    # per-element working set: double-buffered in + out (4*itemsize) + f32 `e`
    return sub * hw_pad * (4 * itemsize + 4) <= _FAST_PATH_BUDGET


def _choose_fast_row_tile(rows, hw, itemsize, sub):
    hw_pad = _align_up(hw, 128)                       # lane-padded VMEM footprint
    rt = max(sub, (_TARGET_BLOCK_BYTES // (hw_pad * itemsize)) // sub * sub)
    rt = min(rt, _align_up(rows, sub))
    # >=2 row blocks when possible: feeds both v7x TensorCores; blocks stay
    # >= ~TARGET/2 so this costs nothing on single-TC v5e/v6e.
    if rows > sub and pl.cdiv(rows, rt) < 2:
        rt = max(sub, _align_up(pl.cdiv(rows, 2), sub))
    return rt


def _choose_tiled_tiles(rows, hw, itemsize, sub):
    rt = min(_align_up(rows, sub), 256)
    if rows > sub and pl.cdiv(rows, rt) < 2:
        rt = max(sub, _align_up(pl.cdiv(rows, 2), sub))
    ht = max(512, (_TARGET_BLOCK_BYTES // (rt * itemsize)) // 128 * 128)
    ht = min(ht, _align_up(hw, 128))
    return rt, ht


# ---------------------------------------------------------------------------
# pallas_call wrappers (no padding, no output slicing: cdiv grids + masking)
# ---------------------------------------------------------------------------

def _softmax_rowblock(x2d, row_tile):
    rows, hw = x2d.shape
    in_block = row_tile * _align_up(hw, 128) * x2d.dtype.itemsize
    return pl.pallas_call(
        _softmax_rowblock_kernel,
        out_shape=jax.ShapeDtypeStruct((rows, hw), x2d.dtype),
        grid=(pl.cdiv(rows, row_tile),),
        in_specs=[pl.BlockSpec((row_tile, hw), lambda i: (i, 0))],
        out_specs=pl.BlockSpec((row_tile, hw), lambda i: (i, 0)),
        compiler_params=pltpu.CompilerParams(
            dimension_semantics=("parallel",),
            vmem_limit_bytes=_vmem_limit(in_block),
        ),
    )(x2d)


def _softmax_tiled(x2d, row_tile, hw_tile):
    rows, hw = x2d.shape
    grid = (pl.cdiv(rows, row_tile), pl.cdiv(hw, hw_tile))
    in_block = row_tile * hw_tile * x2d.dtype.itemsize
    vmem = _vmem_limit(in_block)

    stats_kernel = functools.partial(
        _softmax_stats_kernel, hw=hw, hw_tile=hw_tile,
        mask_cols=(hw % hw_tile != 0))

    lse = pl.pallas_call(
        stats_kernel,
        out_shape=jax.ShapeDtypeStruct((rows, 1), jnp.float32),
        grid=grid,
        in_specs=[pl.BlockSpec((row_tile, hw_tile), lambda i, j: (i, j))],
        out_specs=pl.BlockSpec((row_tile, 1), lambda i, j: (i, 0)),
        scratch_shapes=[pltpu.VMEM((row_tile, 1), jnp.float32),
                        pltpu.VMEM((row_tile, 1), jnp.float32)],
        compiler_params=pltpu.CompilerParams(
            dimension_semantics=("parallel", "arbitrary"),
            vmem_limit_bytes=vmem,
        ),
    )(x2d)

    return pl.pallas_call(
        _softmax_apply_kernel,
        out_shape=jax.ShapeDtypeStruct((rows, hw), x2d.dtype),
        grid=grid,
        in_specs=[pl.BlockSpec((row_tile, hw_tile), lambda i, j: (i, j)),
                  pl.BlockSpec((row_tile, 1), lambda i, j: (i, 0))],
        out_specs=pl.BlockSpec((row_tile, hw_tile), lambda i, j: (i, j)),
        compiler_params=pltpu.CompilerParams(
            dimension_semantics=("parallel", "parallel"),
            vmem_limit_bytes=vmem,
        ),
    )(x2d, lse)


@functools.partial(jax.jit, static_argnames=("row_tile", "hw_tile"))
def softmax_planar(x, *, row_tile=None, hw_tile=None):
    """Softmax over the flattened last two dims of x (any leading dims)."""
    orig_shape = x.shape
    assert len(orig_shape) >= 2, "expects at least (..., H, W)"
    hw = orig_shape[-2] * orig_shape[-1]
    rows = 1
    for d in orig_shape[:-2]:
        rows *= d
    x2d = x.reshape(rows, hw)

    itemsize = jnp.dtype(x.dtype).itemsize
    sub = _sublane(x.dtype)

    if hw_tile is None and _fast_path_ok(hw, itemsize, sub):
        rt = row_tile if row_tile is not None else _choose_fast_row_tile(
            rows, hw, itemsize, sub)
        out = _softmax_rowblock(x2d, rt)
    else:
        # H*W too large for a VMEM-resident row (or caller forced tiling):
        # two-pass streaming online softmax over H*W blocks.
        auto_rt, auto_ht = _choose_tiled_tiles(rows, hw, itemsize, sub)
        rt = row_tile if row_tile is not None else auto_rt
        ht = hw_tile if hw_tile is not None else auto_ht
        out = _softmax_tiled(x2d, rt, ht)

    return out.reshape(orig_shape)


if __name__ == "__main__":
    key = jax.random.PRNGKey(0)
    # Small NCHW input consistent with the PyTorch module's forward.
    x = jax.random.normal(key, (2, 4, 16, 16), dtype=jnp.float32)
    ref = jax.nn.softmax(x.reshape(2, 4, -1), axis=-1).reshape(x.shape)

    # Fast path (full H*W row resident in VMEM).
    out = jax.block_until_ready(softmax_planar(x))
    assert out.shape == x.shape and out.dtype == x.dtype
    assert jnp.allclose(out, ref, atol=1e-6, rtol=1e-6)
    assert jnp.allclose(out.sum(axis=(-2, -1)), 1.0, atol=1e-5)

    # Non-divisible row count exercises the cdiv / edge-block path (no jnp.pad).
    x2 = jax.random.normal(jax.random.PRNGKey(1), (3, 5, 10, 10), dtype=jnp.float32)
    ref2 = jax.nn.softmax(x2.reshape(15, -1), axis=-1).reshape(x2.shape)
    out2 = jax.block_until_ready(softmax_planar(x2))
    assert jnp.allclose(out2, ref2, atol=1e-6, rtol=1e-6)

    # Force the two-pass streaming path, including the in-kernel lane mask on
    # the last (partial) H*W block (hw=400, hw_tile=256).
    x3 = jax.random.normal(jax.random.PRNGKey(2), (2, 4, 20, 20), dtype=jnp.float32)
    ref3 = jax.nn.softmax(x3.reshape(8, -1), axis=-1).reshape(x3.shape)
    out3 = jax.block_until_ready(softmax_planar(x3, row_tile=8, hw_tile=256))
    assert jnp.allclose(out3, ref3, atol=1e-6, rtol=1e-6)
    assert jnp.allclose(out3.sum(axis=(-2, -1)), 1.0, atol=1e-5)

    print("KERNEL_OK")
</pallas_src>

<mosaic_0001>
module attributes {stable_mosaic.version = 11 : i64} {
  func.func @_softmax_rowblock_kernel(%arg0: i32, %arg1: memref<8x256xf32, #tpu.memory_space<vmem>>, %arg2: memref<8x256xf32, #tpu.memory_space<vmem>>) attributes {dimension_semantics = [#tpu.dimension_semantics<parallel>], iteration_bounds = array<i64: 1>, scalar_prefetch = 0 : i64, scratch_operands = 0 : i64, tpu.core_type = #tpu.core_type<tc>, window_params = [{transform_indices = @transform_0, window_bounds = array<i64: 8, 256>}, {transform_indices = @transform_1, window_bounds = array<i64: 8, 256>}]} {
    %c0 = arith.constant 0 : index
    %c0_0 = arith.constant 0 : index
    %0 = vector.load %arg1[%c0, %c0_0] : memref<8x256xf32, #tpu.memory_space<vmem>>, vector<8x256xf32>
    %cst = arith.constant dense<0xFF800000> : vector<8xf32>
    %1 = vector.multi_reduction <maximumf>, %0, %cst [1] : vector<8x256xf32> to vector<8xf32>
    %2 = vector.shape_cast %1 : vector<8xf32> to vector<8x1xf32>
    %3 = vector.broadcast %2 : vector<8x1xf32> to vector<8x256xf32>
    %4 = arith.subf %0, %3 : vector<8x256xf32>
    %5 = math.exp %4 : vector<8x256xf32>
    %cst_1 = arith.constant dense<0.000000e+00> : vector<8xf32>
    %6 = vector.multi_reduction <add>, %5, %cst_1 [1] : vector<8x256xf32> to vector<8xf32>
    %7 = vector.shape_cast %6 : vector<8xf32> to vector<8x1xf32>
    %8 = tpu.reciprocal %7 : vector<8x1xf32> -> vector<8x1xf32>
    %9 = vector.broadcast %8 : vector<8x1xf32> to vector<8x256xf32>
    %10 = arith.mulf %5, %9 : vector<8x256xf32>
    %c0_2 = arith.constant 0 : index
    %c0_3 = arith.constant 0 : index
    %11 = vector.load %arg2[%c0_2, %c0_3] : memref<8x256xf32, #tpu.memory_space<vmem>>, vector<8x256xf32>
    tpu.vector_store %arg2[%c0_2, %c0_3], %10 {strides = array<i32>} : memref<8x256xf32, #tpu.memory_space<vmem>>, vector<8x256xf32>,
    return
  }
  func.func @transform_0(%arg0: i32) -> (i32, i32) {
    %c0_i32 = arith.constant 0 : i32
    %c0_i32_0 = arith.constant 0 : i32
    return %arg0, %c0_i32 : i32, i32
  }
  func.func @transform_1(%arg0: i32) -> (i32, i32) {
    %c0_i32 = arith.constant 0 : i32
    %c0_i32_0 = arith.constant 0 : i32
    return %arg0, %c0_i32 : i32, i32
  }
}

</mosaic_0001>

<bundles_post_ra>
// kernel: softmax_planar.1
= control target key start
LH: loop header
LB: loop body
LE: loop exit
PB: predicated region body
PF: predicated region fallthrough
CT: control target
= control target key end

     0   :  { %s59_s0 = inlined_call_operand.vmem [shape: f32[8,256], index: 0, kind: input, shape index: {}]   ;;  %s60_s1 = inlined_call_operand.vmem [shape: f32[8,256], index: 1, kind: output, shape index: {}]  }
   0x1   :  { %v8_v0 = vld [vmem:[%s59_s0] sm:$0xff]  ;;  %v9_v1 = vld [vmem:[%s59_s0 + $0x8] sm:$0xff] }
   0x2   :  { %v10_v2 = vmax.f32 %v8_v0, %v9_v1 }
   0x4   :  { %11 = vmax.xlane.f32.xlu0 %v10_v2 }
  0x91   :  { %v12_v3 = vpop.xlane.xlu0 %11 }
  0x92   :  { %v13_v4 = vsub.f32 %v8_v0, %v12_v3  ;;  %v14_v5 = vsub.f32 %v9_v1, %v12_v3 }
  0x94   :  { %v15_v6 = vmul.f32 1.442695, %v13_v4  ;;  %v17_v7 = vmul.f32 1.442695, %v14_v5 }
  0x96   :  { %31 = vpow2.f32 %v15_v6 }
  0x97   :  { %33 = vpow2.f32 %v17_v7 }
  0xa0   :  { %v32_v8 = vpop.eup %31 }
  0xa1   :  { %v34_v9 = vpop.eup %33 }
  0xa2   :  { %v19_v10 = vadd.f32 %v34_v9, %v32_v8 }
  0xa4   :  { %20 = vadd.xlane.f32.xlu0 %v19_v10 }
 0x131   :  { %v21_v11 = vpop.xlane.xlu0 %20 }
 0x132   :  { %35 = vrcp.f32 %v21_v11 }
 0x13c   :  { %v36_v12 = vpop.eup %35 }
 0x13d   :  { %v23_v13 = vmul.f32 %v36_v12, %v32_v8  ;;  %v24_v14 = vmul.f32 %v36_v12, %v34_v9 }
 0x13f   :  { %25 = vst [vmem:[%s60_s1] sm:$0xff] %v23_v13  ;;  %26 = vst [vmem:[%s60_s1 + $0x8] sm:$0xff] %v24_v14 }

</bundles_post_ra>
